<compile_context>
chip_gen: v7x
topology: tpu7x:2x2x1
jax: 0.10.0
libtpu: 0.0.40
codegen_flags: <defaults>
</compile_context>

<pallas_src>
import functools

import jax
import jax.numpy as jnp
from jax import lax
from jax.experimental import pallas as pl
from jax.experimental.pallas import tpu as pltpu


def _softmax_kernel(x_ref, o_ref):
    """Row softmax, D >= 128 path: one reduction segment per row."""
    x = x_ref[...]                                  # (rows, D) f32 tile in VMEM
    m = jnp.max(x, axis=-1, keepdims=True)          # XLU cross-lane reduce
    e = jnp.exp(x - m)                              # EUP (numerically stable)
    s = jnp.sum(e, axis=-1, keepdims=True)          # XLU
    r = pl.reciprocal(s, approx=True)               # EUP approx recip (per-row)
    r = r * (2.0 - s * r)                           # one Newton step -> ~f32 exact
    o_ref[...] = e * r


def _softmax_folded_kernel(k, d, x_ref, o_ref):
    """Lane-dense path for d < 128: each memory row holds k logical rows of width d.

    Segmented max/sum are computed with full-width masked reductions (iota/where/
    max/sum only -- all robust Mosaic lowerings), so the load, the final store and
    the HBM DMA all stay 128-lane dense.
    """
    x = x_ref[...]                                  # (rows, k*d) f32
    lane = lax.broadcasted_iota(jnp.int32, x.shape, 1)
    seg = lane // d                                 # segment id (logical row) per lane
    out = jnp.zeros_like(x)
    for i in range(k):                              # static unroll, k <= 16
        xi = jnp.where(seg == i, x, -jnp.inf)
        m = jnp.max(xi, axis=-1, keepdims=True)     # per-row max of segment i
        e = jnp.exp(xi - m)                         # exactly 0 outside segment i
        s = jnp.sum(e, axis=-1, keepdims=True)
        r = pl.reciprocal(s, approx=True)
        r = r * (2.0 - s * r)
        out = out + e * r
    o_ref[...] = out                                # unmasked, lane-dense store


# Tiling policy (mem-bound kernel):
#  * ~2 MiB input slab cap: past ~1 MiB-class tiles bigger slabs buy no HBM
#    bandwidth, only VMEM pressure and fewer grid steps.
#  * at least _MIN_STEPS grid steps for non-tiny inputs so prefetch of block i+1
#    overlaps compute/writeback of block i, and rows shard across v7x's 2 TCs.
_SLAB_BYTES = 2 * 1024 * 1024
_MIN_STEPS = 8


def _choose_block_rows(n: int, d: int) -> int:
    """Row block: multiple of 8, <= ~2 MiB slab, and leaving >= _MIN_STEPS steps."""
    if n <= 8:
        return n                      # single tiny block; full-dim block is legal
    cap = max(8, (_SLAB_BYTES // (4 * d)) // 8 * 8)
    rows_for_steps = max(8, (n // _MIN_STEPS) // 8 * 8)
    return min(cap, rows_for_steps)


def _run(kernel, x: jax.Array, block_rows: int) -> jax.Array:
    n, d = x.shape
    grid = (pl.cdiv(n, block_rows),)
    # Note on a partial last row-block: padded rows may compute exp of stale VMEM
    # data but are never written back -- intentional and correct.
    return pl.pallas_call(
        kernel,
        out_shape=jax.ShapeDtypeStruct((n, d), x.dtype),
        grid_spec=pltpu.PrefetchScalarGridSpec(
            num_scalar_prefetch=0,
            grid=grid,
            in_specs=[pl.BlockSpec((block_rows, d), lambda i: (i, 0))],
            out_specs=pl.BlockSpec((block_rows, d), lambda i: (i, 0)),
        ),
        compiler_params=pltpu.CompilerParams(
            # "parallel" lets the row loop shard across v7x's 2 TensorCores;
            # neutral on single-core v5e/v6e. Default scoped VMEM limit is enough
            # for ~2 MiB slabs, so no explicit vmem_limit_bytes.
            dimension_semantics=("parallel",),
        ),
        cost_estimate=pl.CostEstimate(
            flops=5 * n * d,
            transcendentals=n * d,
            bytes_accessed=2 * n * d * 4,
        ),
    )(x)


def pallas_softmax(x: jax.Array, block_rows: int | None = None) -> jax.Array:
    """Softmax over the last axis of a 2-D float32 array via a Pallas TPU kernel."""
    assert x.ndim == 2, "expected rank-2 input (Softmax_F32_R2, dim=1 == last axis)"
    n, d = x.shape

    # Lane-dense folded path for narrow rows: fold k = 128 // d consecutive rows
    # into one 128-lane row (free contiguous reshape), segmented softmax in-kernel,
    # then unfold. Avoids masked vst.msk stores and narrow HBM DMA rows.
    if (block_rows is None and 8 <= d < 128 and 128 % d == 0
            and n % (128 // d) == 0):
        k = 128 // d
        xf = x.reshape(n // k, k * d)
        bf = _choose_block_rows(n // k, k * d)
        of = _run(functools.partial(_softmax_folded_kernel, k, d), xf, bf)
        return of.reshape(n, d)

    if block_rows is None:
        block_rows = _choose_block_rows(n, d)
    return _run(_softmax_kernel, x, block_rows)


if __name__ == "__main__":
    key = jax.random.PRNGKey(0)
    k1, k2, k3 = jax.random.split(key, 3)

    # Lane-dense D, multi-step grid (16 rows -> 2 blocks of 8, pipelined).
    x1 = jax.random.normal(k1, (16, 256), dtype=jnp.float32)
    out1 = pallas_softmax(x1)

    # Narrow rows (D=32 < 128): folded lane-dense path, k=4 -> (2, 128) slab.
    x2 = jax.random.normal(k2, (8, 32), dtype=jnp.float32)
    out2 = pallas_softmax(x2)

    # Multi-step grid with a partial last row block (20 = 8 + 8 + 4).
    x3 = jax.random.normal(k3, (20, 256), dtype=jnp.float32)
    out3 = pallas_softmax(x3, block_rows=8)

    jax.block_until_ready((out1, out2, out3))

    for x, out in ((x1, out1), (x2, out2), (x3, out3)):
        ref = jax.nn.softmax(x, axis=1)
        assert out.shape == x.shape and out.dtype == x.dtype
        assert jnp.allclose(out, ref, atol=1e-5, rtol=1e-5), "mismatch vs reference"
        assert jnp.allclose(jnp.sum(out, axis=1), 1.0, atol=1e-5), "rows do not sum to 1"

    print("KERNEL_OK")
</pallas_src>

<mosaic_0001>
module attributes {stable_mosaic.version = 11 : i64} {
  func.func @_softmax_kernel(%arg0: i32, %arg1: memref<8x256xf32, #tpu.memory_space<vmem>>, %arg2: memref<8x256xf32, #tpu.memory_space<vmem>>) attributes {dimension_semantics = [#tpu.dimension_semantics<parallel>], iteration_bounds = array<i64: 2>, scalar_prefetch = 0 : i64, scratch_operands = 0 : i64, tpu.core_type = #tpu.core_type<tc>, window_params = [{transform_indices = @transform_0, window_bounds = array<i64: 8, 256>}, {transform_indices = @transform_1, window_bounds = array<i64: 8, 256>}]} {
    %c0 = arith.constant 0 : index
    %c0_0 = arith.constant 0 : index
    %0 = vector.load %arg1[%c0, %c0_0] : memref<8x256xf32, #tpu.memory_space<vmem>>, vector<8x256xf32>
    %cst = arith.constant dense<0xFF800000> : vector<8xf32>
    %1 = vector.multi_reduction <maximumf>, %0, %cst [1] : vector<8x256xf32> to vector<8xf32>
    %2 = vector.shape_cast %1 : vector<8xf32> to vector<8x1xf32>
    %3 = vector.broadcast %2 : vector<8x1xf32> to vector<8x256xf32>
    %4 = arith.subf %0, %3 : vector<8x256xf32>
    %5 = math.exp %4 : vector<8x256xf32>
    %cst_1 = arith.constant dense<0.000000e+00> : vector<8xf32>
    %6 = vector.multi_reduction <add>, %5, %cst_1 [1] : vector<8x256xf32> to vector<8xf32>
    %7 = vector.shape_cast %6 : vector<8xf32> to vector<8x1xf32>
    %8 = tpu.reciprocal %7 {approx = true} : vector<8x1xf32> -> vector<8x1xf32>
    %9 = arith.mulf %7, %8 : vector<8x1xf32>
    %cst_2 = arith.constant 2.000000e+00 : f32
    %10 = vector.broadcast %cst_2 : f32 to vector<8x1xf32>
    %11 = arith.subf %10, %9 : vector<8x1xf32>
    %12 = arith.mulf %8, %11 : vector<8x1xf32>
    %13 = vector.broadcast %12 : vector<8x1xf32> to vector<8x256xf32>
    %14 = arith.mulf %5, %13 : vector<8x256xf32>
    %c0_3 = arith.constant 0 : index
    %c0_4 = arith.constant 0 : index
    %15 = vector.load %arg2[%c0_3, %c0_4] : memref<8x256xf32, #tpu.memory_space<vmem>>, vector<8x256xf32>
    tpu.vector_store %arg2[%c0_3, %c0_4], %14 {strides = array<i32>} : memref<8x256xf32, #tpu.memory_space<vmem>>, vector<8x256xf32>,
    return
  }
  func.func @transform_0(%arg0: i32) -> (i32, i32) {
    %c0_i32 = arith.constant 0 : i32
    %c0_i32_0 = arith.constant 0 : i32
    return %arg0, %c0_i32 : i32, i32
  }
  func.func @transform_1(%arg0: i32) -> (i32, i32) {
    %c0_i32 = arith.constant 0 : i32
    %c0_i32_0 = arith.constant 0 : i32
    return %arg0, %c0_i32 : i32, i32
  }
}

</mosaic_0001>

<bundles_post_ra>
// kernel: tpu_custom_call.1
= control target key start
LH: loop header
LB: loop body
LE: loop exit
PB: predicated region body
PF: predicated region fallthrough
CT: control target
= control target key end

     0   :  { %6 = vsyncpa [#allocation3], 0  ;;  %s579_s0 = inlined_call_operand.hbm [shape: f32[16,256], index: 0, kind: input, shape index: {}]   ;;  %s580_s1 = inlined_call_operand.hbm [shape: f32[16,256], index: 1, kind: output, shape index: {}]  }
   0x1   :  { %8 = vsyncpa [#allocation3 + $0x1], 0 }
   0x2   :  { %9 = vsyncpa [#allocation4], 0 }
   0x3   :  { %11 = vsyncpa [#allocation4 + $0x1], 0  ;;  %s418_s6 = smov 0   ;;  %s420_s7 = smov 0  }
   0x4   :  { %s422_s8 = smov 0   ;;  %s424_s9 = smov 0  }
   0x5 LB: > { %s439_s10 = sadd.s32 4294967295, %s404_s9   ;;  %s240_s11 = sadd.s32 4294967294, %s404_s9   ;;  %s404_s9 = sphi %s424_s9, %s595_s9   ;;  %s400_s8 = sphi %s422_s8, %s594_s8   ;;  %s396_s7 = sphi %s420_s7, %s593_s7   ;;  %s392_s6 = sphi %s418_s6, %s592_s6  }
   0x6   : > { %s443_s12 = sadd.s32 1, %s404_s9   ;;  %s24_s13 = sadd.s32 1, %s400_s8 }
   0x7   : > { %s21_s14 = ssub.s32 %s404_s9, %s443_s12  ;;  %p31_p0 = scmp.ne.s32.totalorder %s400_s8, %s396_s7 }
   0x8   : > { %p22_p1 = scmp.eq.s32.totalorder %s21_s14, 0  ;;  %p32_p2 = scmp.eq.s32.totalorder %s404_s9, 0 }
   0x9   : > { %p37_p3 = scmp.ne.s32.totalorder %s396_s7, %s392_s6  ;;  %p38_p4 = scmp.eq.s32.totalorder %s439_s10, 0 }
   0xa   : > { %s455_s15 = scalar_select %p22_p1, %s400_s8, %s24_s13  }
   0xb   : > { %p457_p5 = por %p32_p2, %p31_p0  ;;  %p461_p6 = por %p38_p4, %p37_p3 }
   0xc   : > { %p61_p7 = scmp.eq.s32.totalorder %s439_s10, 1  ;;  %p67_p8 = scmp.eq.s32.totalorder %s240_s11, 1 }
   0xd   : > { %p268_p10 = scmp.lt.s32.totalorder %s404_s9, 2  ;;  %s87_s20 = sand.u32 1, %s400_s8  }
   0xe   : > { %p468_p11 = por %p61_p7, %p31_p0  ;;  %p472_p12 = por %p67_p8, %p37_p3 }
   0xf   : > { %s254_s21 = sshll.u32 %s404_s9, 8  ;;  %s243_s22 = sshll.u32 %s87_s20, 4 }
  0x10   : > { %s584_s18 = scalar_select %p468_p11, 1, 0 }
  0x11   : > { %s585_s19 = scalar_select %p472_p12, 1, 0 }
  0x12   : > { %s481_s25 = scalar_lea.hbm %s579_s0, %s254_s21  ;;  %s91_s26 = scalar_lea.vmem [#allocation2], %s243_s22 }
  0x13   : > { %s99_s27 = sshll.u32 %s91_s26, 4  ;;  %p485_p13 = pnand %p268_p10, %p457_p5  ;;  %s489_s27 = int_to_ptr.vmem [resolvable:$true] %s99_s27 }
  0x14   : > { %s88_s29 = scalar_lea.sflag [#allocation3], %s87_s20  ;;  %s308_s30 = scalar_lea.hbm %s481_s25, 256 }
  0x15   : > { %p309_p2 = scmp.ne.s32.totalorder %s481_s25, %s308_s30  ;;  %p310_p3 = pneg %p485_p13 }
  0x16   : > { %s313_s4 = scalar_lea.hbm %s579_s0, 512  ;;  %p314_p5 = scmp.lt.u32.totalorder %s481_s25, %s579_s0 }
  0x17   : > { %p311_p4 = pnand %p310_p3, %p309_p2  ;;  %p315_p8 = scmp.lt.u32.totalorder %s313_s4, %s308_s30 }
  0x18   : > { %p317_p9 = scmp.lt.u32.totalorder %s308_s30, %s481_s25 }
  0x19   : > { %p312_p7 = pneg %p311_p4  ;;  %p316_p10 = por %p315_p8, %p314_p5 }
  0x1b   : > { %p318_p0 = por %p317_p9, %p316_p10 }
  0x1d   : > { %p319_p1 = pnand %p318_p0, %p312_p7 }
  0x1f   : > { %322 = shalt.err (!%p319_p1)
}
  0x20   : > { %s323_s13 = scalar_lea.vmem %s489_s27, 256  ;;  %s406_s14 = smov [#allocation2]  }
  0x21   : > { %p324_p2 = scmp.ne.s32.totalorder %s489_s27, %s323_s13  ;;  %s328_s16 = sshll.u32 %s406_s14, 4  ;;  %s329_s16 = int_to_ptr.vmem [resolvable:$false] %s328_s16 }
  0x22   : > { %s330_s20 = scalar_lea.vmem %s329_s16, 512  ;;  %p331_p11 = scmp.lt.s32.totalorder %s489_s27, %s329_s16 }
  0x23   : > { %p326_p4 = pnand %p324_p2, %p310_p3  ;;  %p332_p5 = scmp.lt.s32.totalorder %s330_s20, %s323_s13 }
  0x25   : > { %p327_p12 = pneg %p326_p4  ;;  %p333_p8 = por %p332_p5, %p331_p11 }
  0x27   : > { %p334_p9 = pnand %p333_p8, %p327_p12 }
  0x29   : > { %337 = shalt.err (!%p334_p9)
}
  0x2a   : > { %263 = dma.hbm_to_vmem [thread:$0]  (!%p485_p13), %s481_s25, 256, %s489_s27, %s88_s29  }
  0x2b   : > { %p587_p0 = scmp.lt.s32.totalorder %s404_s9, 3  ;;  %p588_p1 = scmp.ge.s32.totalorder %s404_s9, 1 }
  0x2d   : > { %p105_p3 = pnand %p588_p1, %p587_p0 }
  0x2e   : > { %s523_s21 = sand.u32 (!%p105_p3), 1, %s396_s7  }
  0x2f   : > { %108 = sbr.rel (%p105_p3) target bundleno = 393 (0x189), region = 24  ;;  %s247_s22 = sshll.u32 (!%p105_p3), %s523_s21, 4 }
  0x30   : > { %s111_s23 = scalar_lea.sflag (!%p105_p3), [#allocation3], %s523_s21  ;;  %s114_s24 = scalar_lea.vmem (!%p105_p3), [#allocation2], %s247_s22 }
  0x36   : > { %383 = dma.done.wait (%p461_p6), %s111_s23, 256  }
  0x37   : > { %385 = vsyncadd (%p461_p6), %s111_s23, 4294967040  ;;  %v133_v0 = vld [vmem:[%s114_s24] sm:$0xff]  ;;  %v134_v1 = vld [vmem:[%s114_s24 + $0x8] sm:$0xff]  ;;  %s255_s17 = sshll.u32 %s439_s10, 8  ;;  %s132_s25 = scalar_lea.vmem [#allocation5], %s247_s22 }
  0x38   : > { %v135_v2 = vmax.f32 %v133_v0, %v134_v1  ;;  %s170_s26 = sshll.u32 %s132_s25, 4  ;;  %s535_s29 = scalar_lea.hbm %s580_s1, %s255_s17  ;;  %s537_s26 = int_to_ptr.vmem [resolvable:$true] %s170_s26 }
  0x39   : > { %s156_s30 = scalar_lea.sflag [#allocation4], %s523_s21  ;;  %s338_s2 = scalar_lea.vmem %s537_s26, 256 }
  0x3a   : > { %136 = vmax.xlane.f32.xlu0 %v135_v2  ;;  %p339_p6 = scmp.ne.s32.totalorder %s537_s26, %s338_s2  ;;  %p589_p11 = scmp.ne.s32.totalorder %s584_s18, 0 }
  0x3b   : > { %s407_s10 = smov [#allocation5]  }
  0x3c   : > { %p340_p12 = pnand %p339_p6, %p589_p11  ;;  %s342_s3 = sshll.u32 %s407_s10, 4  ;;  %s343_s3 = int_to_ptr.vmem [resolvable:$false] %s342_s3 }
  0x3d   : > { %s344_s4 = scalar_lea.vmem %s343_s3, 512  ;;  %p345_p7 = scmp.lt.s32.totalorder %s537_s26, %s343_s3 }
  0x3e   : > { %p341_p13 = pneg %p340_p12  ;;  %p346_p10 = scmp.lt.s32.totalorder %s344_s4, %s338_s2 }
  0x40   : > { %p347_p2 = por %p346_p10, %p345_p7 }
  0x42   : > { %p348_p4 = pnand %p347_p2, %p341_p13 }
  0xc7   : > { %v137_v3 = vpop.xlane.xlu0 %136 }
  0xc8   : > { %v138_v4 = vsub.f32 %v133_v0, %v137_v3  ;;  %v139_v5 = vsub.f32 %v134_v1, %v137_v3 }
  0xca   : > { %v140_v6 = vmul.f32 1.442695, %v138_v4  ;;  %v142_v7 = vmul.f32 1.442695, %v139_v5 }
  0xcc   : > { %302 = vpow2.f32 %v140_v6 }
  0xcd   : > { %304 = vpow2.f32 %v142_v7 }
  0xd6   : > { %v303_v8 = vpop.eup %302 }
  0xd7   : > { %v305_v9 = vpop.eup %304 }
  0xd8   : > { %v144_v10 = vadd.f32 %v305_v9, %v303_v8 }
  0xda   : > { %145 = vadd.xlane.f32.xlu0 %v144_v10 }
 0x167   : > { %v146_v11 = vpop.xlane.xlu0 %145 }
 0x168   : > { %306 = vrcp.f32 %v146_v11 }
 0x172   : > { %v307_v12 = vpop.eup %306 }
 0x173   : > { %v148_v13 = vmul.f32 %v307_v12, %v146_v11 }
 0x175   : > { %v149_v14 = vsub.f32 2.0, %v148_v13 }
 0x177   : > { %v150_v15 = vmul.f32 %v307_v12, %v149_v14 }
 0x179   : > { %v151_v16 = vmul.f32 %v303_v8, %v150_v15  ;;  %v152_v17 = vmul.f32 %v305_v9, %v150_v15 }
 0x17b   : > { %153 = vst [vmem:[%s132_s25] sm:$0xff] %v151_v16  ;;  %154 = vst [vmem:[%s132_s25 + $0x8] sm:$0xff] %v152_v17 }
 0x17c   : > { %351 = shalt.err (!%p348_p4)
}
 0x17d   : > { %s352_s5 = scalar_lea.hbm %s535_s29, 256  ;;  %s356_s14 = scalar_lea.hbm %s580_s1, 512 }
 0x17e   : > { %p353_p5 = scmp.ne.s32.totalorder %s535_s29, %s352_s5  ;;  %p357_p0 = scmp.lt.u32.totalorder %s535_s29, %s580_s1 }
 0x17f   : > { %p358_p1 = scmp.lt.u32.totalorder %s356_s14, %s352_s5  ;;  %p360_p6 = scmp.lt.u32.totalorder %s352_s5, %s535_s29 }
 0x180   : > { %p354_p8 = pnand %p353_p5, %p589_p11 }
 0x181   : > { %p359_p3 = por %p358_p1, %p357_p0 }
 0x182   : > { %p355_p9 = pneg %p354_p8 }
 0x183   : > { %p361_p12 = por %p360_p6, %p359_p3 }
 0x185   : > { %p362_p13 = pnand %p361_p12, %p355_p9 }
 0x187   : > { %365 = shalt.err (!%p362_p13)
}
 0x188   : > { %258 = dma.vmem_to_hbm [thread:$0]  (%p589_p11), %s537_s26, 256, %s535_s29, %s156_s30  }
 0x189 PF: > { %s182_s21 = sand.u32 1, %s392_s6   ;;  %p590_p7 = scmp.ne.s32.totalorder %s585_s19, 0 }
 0x18a   : > { %p591_p10 = scmp.ge.s32.totalorder %s404_s9, 2  ;;  %s183_s22 = scalar_lea.sflag [#allocation4], %s182_s21 }
 0x18c   : > { %p265_p2 = pnand %p591_p10, %p590_p7 }
 0x18e   : > { %387 = dma.done.wait (!%p265_p2), %s183_s22, 256  }
 0x18f   : > { %389 = vsyncadd (!%p265_p2), %s183_s22, 4294967040  ;;  %p14_p4 = scmp.ge.s32.totalorder %s443_s12, 4   ;;  %s592_s6 = smov %s396_s7 }
 0x190   : > { %s593_s7 = smov %s400_s8  ;;  %s594_s8 = smov %s455_s15 }
 0x191   : > { %s595_s9 = smov %s443_s12  ;;  %16 = sbr.rel (!%p14_p4) target bundleno = 5 (0x5), region = 69 }
 0x198   :  { %188 = vsyncpa [#allocation3], 1 }
 0x199   :  { %190 = vsyncpa [#allocation3 + $0x1], 1 }
 0x19a   :  { %191 = vsyncpa [#allocation4], 1 }
 0x19b   :  { %193 = vsyncpa [#allocation4 + $0x1], 1 }

</bundles_post_ra>
